<compile_context>
chip_gen: v7x
topology: tpu7x:2x2x1
jax: 0.10.0
libtpu: 0.0.40
codegen_flags: <defaults>
</compile_context>

<pallas_src>
import functools

import jax
import jax.numpy as jnp
from jax.experimental import pallas as pl
from jax.experimental.pallas import tpu as pltpu


_DEFAULT_BLOCK_BYTES = 2 * 1024 * 1024   # per-input block size target (~2 MiB)


@functools.lru_cache(maxsize=None)
def _num_tensorcores() -> int:
    """2-way core split only on v7x (2 TCs/chip); 1 elsewhere (v5e/v6e/other)."""
    try:
        kind = jax.devices()[0].device_kind.lower()
    except Exception:  # pragma: no cover - defensive; default to the safe value
        return 1
    return 2 if ("v7" in kind or "7x" in kind) else 1


def _make_mse_kernel(tm: int, steps: int, num_blocks: int, rows: int,
                     needs_last_mask: bool, needs_guard: bool):
    """Kernel: accumulate per-lane partial sums of (x - t)^2 into out_ref."""

    def _accumulate(x_ref, t_ref, out_ref, vb, mask_last: bool):
        # Read native dtype (bf16 stays bf16 in HBM); accumulate in f32.
        d = x_ref[...].astype(jnp.float32) - t_ref[...].astype(jnp.float32)
        sq = d * d
        if mask_last:
            # Only the final real block can be partial: zero rows past `rows`.
            # `valid` is in [1, tm] here, so plain int32 arithmetic is safe.
            valid = rows - vb * tm
            row = jax.lax.broadcasted_iota(jnp.int32, (tm, 128), 0)
            sq = jnp.where(row < valid, sq, 0.0)
        # Per-lane partial accumulation: pure vreg adds (VPU), no per-step
        # cross-lane reduction on the critical path.
        out_ref[...] += jnp.sum(sq.reshape(tm // 8, 8, 128), axis=0,
                                keepdims=True)

    def kernel(x_ref, t_ref, out_ref):
        c = pl.program_id(0)   # core-split axis ("parallel")
        i = pl.program_id(1)   # reduction axis ("arbitrary")
        vb = c * steps + i     # virtual (unclamped) block index

        @pl.when(i == 0)
        def _():
            out_ref[...] = jnp.zeros_like(out_ref)

        if needs_last_mask:
            # Interior blocks: unmasked fast path.  Duplicate steps
            # (vb >= num_blocks) are skipped entirely.
            @pl.when(vb < num_blocks - 1)
            def _():
                _accumulate(x_ref, t_ref, out_ref, vb, False)

            @pl.when(vb == num_blocks - 1)
            def _():
                _accumulate(x_ref, t_ref, out_ref, vb, True)
        elif needs_guard:
            # Even block boundaries, but the core split has duplicate steps.
            @pl.when(vb < num_blocks)
            def _():
                _accumulate(x_ref, t_ref, out_ref, vb, False)
        else:
            # Fully clean steady state: no guard, no mask.
            _accumulate(x_ref, t_ref, out_ref, vb, False)

    return kernel


def _mse_sum_pallas(x2d: jax.Array, t2d: jax.Array, rows: int,
                    block_bytes: int) -> jax.Array:
    """Sum of (x - t)^2 over a lane-dense (rows, 128) slab, via Pallas."""
    itemsize = jnp.dtype(x2d.dtype).itemsize
    sub = max(8, 32 // max(1, itemsize))           # dtype row-packing granule

    # Byte-budgeted row tile (f32: 4096 rows, bf16: 8192 rows for 2 MiB),
    # rounded to the packing granule and clipped to the actual row count.
    tm_budget = max(sub, (block_bytes // (128 * itemsize)) // sub * sub)
    tm = min(tm_budget, rows)

    num_blocks = pl.cdiv(rows, tm)
    num_splits = min(_num_tensorcores(), num_blocks)
    steps = pl.cdiv(num_blocks, num_splits)
    needs_last_mask = (rows % tm) != 0
    needs_guard = (num_splits * steps) != num_blocks

    if not needs_guard:
        def in_map(c, i):
            return (c * steps + i, 0)
    else:
        def in_map(c, i):
            # Clamp so a duplicate step re-reads a valid block; its
            # contribution is skipped via pl.when inside the kernel.
            return (jnp.minimum(c * steps + i, num_blocks - 1), 0)

    out_bytes = num_splits * 8 * 128 * 4
    bytes_accessed = 2 * rows * 128 * itemsize + out_bytes

    partials = pl.pallas_call(
        _make_mse_kernel(tm, steps, num_blocks, rows,
                         needs_last_mask, needs_guard),
        out_shape=jax.ShapeDtypeStruct((num_splits, 8, 128), jnp.float32),
        grid_spec=pltpu.PrefetchScalarGridSpec(
            num_scalar_prefetch=0,
            grid=(num_splits, steps),
            in_specs=[
                pl.BlockSpec((tm, 128), in_map),
                pl.BlockSpec((tm, 128), in_map),
            ],
            # Output block depends only on the parallel axis -> stays resident
            # in VMEM across the reduction axis (accumulator-in-output).
            out_specs=pl.BlockSpec((1, 8, 128), lambda c, i: (c, 0, 0)),
        ),
        compiler_params=pltpu.CompilerParams(
            dimension_semantics=("parallel", "arbitrary"),
        ),
        cost_estimate=pl.CostEstimate(
            flops=3 * rows * 128, transcendentals=0,
            bytes_accessed=bytes_accessed),
    )(x2d, t2d)

    # Tiny final cross-lane reduce (<= 2*8*128 floats) done by XLA.
    return jnp.sum(partials)


def _mse_loss_impl(x: jax.Array, target: jax.Array,
                   block_bytes: int = _DEFAULT_BLOCK_BYTES) -> jax.Array:
    assert x.shape == target.shape, "input / target shape mismatch"
    total = x.size
    # Guard in-kernel int32 row arithmetic (rows = total/128 must fit int32).
    assert total < (1 << 37), "tensor too large for int32 row indexing"

    itemsize = jnp.dtype(x.dtype).itemsize
    sub = max(8, 32 // max(1, itemsize))
    unit = sub * 128
    main = (total // unit) * unit           # kernel-covered prefix (no padding)
    tail = total - main                     # < sub*128 trailing elements

    xf = jnp.ravel(x)
    tf = jnp.ravel(target)

    if main == 0:
        # Smaller than a single (sub, 128) tile: plain JAX is the right tool.
        d = xf.astype(jnp.float32) - tf.astype(jnp.float32)
        return jnp.sum(d * d) / jnp.float32(total)

    rows = main // 128
    x2d = xf[:main].reshape(rows, 128)
    t2d = tf[:main].reshape(rows, 128)
    s = _mse_sum_pallas(x2d, t2d, rows, block_bytes)

    if tail:
        # Ragged tail: tiny plain-JAX reduction, no full-tensor pad/copy.
        dt = xf[main:].astype(jnp.float32) - tf[main:].astype(jnp.float32)
        s = s + jnp.sum(dt * dt)

    return s / jnp.float32(total)


@jax.custom_vjp
def mse_loss_pallas(x: jax.Array, target: jax.Array) -> jax.Array:
    """Mean-squared error over all elements, forward computed in Pallas."""
    return _mse_loss_impl(x, target)


def _mse_fwd(x, target):
    return _mse_loss_impl(x, target), (x, target)


def _mse_bwd(res, g):
    x, target = res
    scale = 2.0 / x.size
    diff = x.astype(jnp.float32) - target.astype(jnp.float32)
    gx = (g * scale) * diff
    return gx.astype(x.dtype), (-gx).astype(target.dtype)


mse_loss_pallas.defvjp(_mse_fwd, _mse_bwd)


class ContentLoss:
    """JAX/Pallas analogue of the PyTorch ContentLoss module."""

    def __init__(self, target: jax.Array):
        # target.detach() in PyTorch -> stop_gradient here.
        self.target = jax.lax.stop_gradient(target)
        self.loss = None

    def __call__(self, x: jax.Array) -> jax.Array:
        # NOTE: mutating self.loss is a Python side effect and will not behave
        # as expected under jax.jit/scan of a surrounding model; prefer
        # forward_with_loss() in traced code.
        self.loss = mse_loss_pallas(x, self.target)
        return x  # pass-through, identical to the PyTorch forward

    def forward_with_loss(self, x: jax.Array):
        """Functional variant: returns (x, loss) with no Python side effects."""
        return x, mse_loss_pallas(x, self.target)


if __name__ == "__main__":
    key = jax.random.PRNGKey(0)
    k1, k2, k3, k4, k5, k6, k7, k8 = jax.random.split(key, 8)

    # Primary: small NCHW conv feature map (N=2, C=4, H=16, W=16).
    x = jax.random.normal(k1, (2, 4, 16, 16), dtype=jnp.float32)
    target = jax.random.normal(k2, (2, 4, 16, 16), dtype=jnp.float32)

    module = ContentLoss(target)
    out = jax.block_until_ready(module(x))
    loss = jax.block_until_ready(module.loss)

    ref_loss = jnp.mean((x - target) ** 2)
    assert out.shape == x.shape and out.dtype == x.dtype
    assert bool(jnp.allclose(out, x)), "forward must return input unchanged"
    assert bool(jnp.allclose(loss, ref_loss, rtol=1e-5, atol=1e-6)), (
        f"loss mismatch: {loss} vs {ref_loss}")

    # Gradient path (custom_vjp): d(loss)/dx = 2 * (x - target) / N.
    g = jax.block_until_ready(jax.grad(lambda a: mse_loss_pallas(a, target))(x))
    g_ref = 2.0 * (x - target) / x.size
    assert bool(jnp.allclose(g, g_ref, rtol=1e-5, atol=1e-6)), "bad gradient"

    # Ragged element count: kernel covers the aligned prefix, the <sub*128
    # tail is a tiny plain-JAX sum (no full-tensor pad/copy).
    xr = jax.random.normal(k3, (3, 5, 7, 11), dtype=jnp.float32)
    tr = jax.random.normal(k4, (3, 5, 7, 11), dtype=jnp.float32)
    lr = jax.block_until_ready(mse_loss_pallas(xr, tr))
    assert bool(jnp.allclose(lr, jnp.mean((xr - tr) ** 2), rtol=1e-5, atol=1e-6))

    # Multi-block f32 with a partial trailing block: exercises the
    # last-block-only mask and (on v7x) the duplicate-step pl.when guard.
    # Small block budget keeps the test tensor tiny.
    xm = jax.random.normal(k5, (1, 41, 8, 128), dtype=jnp.float32)
    tm_ = jax.random.normal(k6, (1, 41, 8, 128), dtype=jnp.float32)
    lm = jax.block_until_ready(_mse_loss_impl(xm, tm_, block_bytes=64 * 1024))
    assert bool(jnp.allclose(lm, jnp.mean((xm - tm_) ** 2), rtol=1e-5, atol=1e-6))

    # Multi-block bf16: native bf16 HBM reads with f32 in-kernel accumulation.
    xb = jax.random.normal(k7, (2, 4, 576, 128), dtype=jnp.bfloat16)
    tb = jax.random.normal(k8, (2, 4, 576, 128), dtype=jnp.bfloat16)
    lb = jax.block_until_ready(_mse_loss_impl(xb, tb, block_bytes=128 * 1024))
    ref_b = jnp.mean((xb.astype(jnp.float32) - tb.astype(jnp.float32)) ** 2)
    assert bool(jnp.allclose(lb, ref_b, rtol=1e-4, atol=1e-6)), (
        f"bf16 multi-block loss mismatch: {lb} vs {ref_b}")

    print("KERNEL_OK")
</pallas_src>

<mosaic_0001>
module attributes {stable_mosaic.version = 11 : i64} {
  func.func @kernel(%arg0: i32, %arg1: i32, %arg2: memref<16x128xf32, #tpu.memory_space<vmem>>, %arg3: memref<16x128xf32, #tpu.memory_space<vmem>>, %arg4: memref<1x8x128xf32, #tpu.memory_space<vmem>>) attributes {dimension_semantics = [#tpu.dimension_semantics<parallel>, #tpu.dimension_semantics<arbitrary>], iteration_bounds = array<i64: 1, 1>, scalar_prefetch = 0 : i64, scratch_operands = 0 : i64, tpu.core_type = #tpu.core_type<tc>, window_params = [{transform_indices = @transform_0, window_bounds = array<i64: 16, 128>}, {transform_indices = @transform_1, window_bounds = array<i64: 16, 128>}, {transform_indices = @transform_2, window_bounds = array<i64: 1, 8, 128>}]} {
    %c0_i32 = arith.constant 0 : i32
    %0 = arith.cmpi eq, %arg1, %c0_i32 : i32
    %1 = arith.extui %0 : i1 to i32
    %c0_i32_0 = arith.constant 0 : i32
    %2 = arith.cmpi ne, %1, %c0_i32_0 : i32
    scf.if %2 {
      %cst_10 = arith.constant 0.000000e+00 : f32
      %13 = vector.broadcast %cst_10 : f32 to vector<1x8x128xf32>
      %c0_11 = arith.constant 0 : index
      %c0_12 = arith.constant 0 : index
      %c0_13 = arith.constant 0 : index
      %14 = vector.load %arg4[%c0_11, %c0_12, %c0_13] : memref<1x8x128xf32, #tpu.memory_space<vmem>>, vector<1x8x128xf32>
      tpu.vector_store %arg4[%c0_11, %c0_12, %c0_13], %13 {strides = array<i32>} : memref<1x8x128xf32, #tpu.memory_space<vmem>>, vector<1x8x128xf32>,
    } else {
    }
    %c0 = arith.constant 0 : index
    %c0_1 = arith.constant 0 : index
    %3 = vector.load %arg2[%c0, %c0_1] : memref<16x128xf32, #tpu.memory_space<vmem>>, vector<16x128xf32>
    %c0_2 = arith.constant 0 : index
    %c0_3 = arith.constant 0 : index
    %4 = vector.load %arg3[%c0_2, %c0_3] : memref<16x128xf32, #tpu.memory_space<vmem>>, vector<16x128xf32>
    %5 = arith.subf %3, %4 : vector<16x128xf32>
    %6 = arith.mulf %5, %5 : vector<16x128xf32>
    %c0_4 = arith.constant 0 : index
    %c0_5 = arith.constant 0 : index
    %c0_6 = arith.constant 0 : index
    %7 = vector.load %arg4[%c0_4, %c0_5, %c0_6] : memref<1x8x128xf32, #tpu.memory_space<vmem>>, vector<1x8x128xf32>
    %8 = vector.shape_cast %6 : vector<16x128xf32> to vector<2x8x128xf32>
    %cst = arith.constant dense<0.000000e+00> : vector<8x128xf32>
    %9 = vector.multi_reduction <add>, %8, %cst [0] : vector<2x8x128xf32> to vector<8x128xf32>
    %10 = vector.shape_cast %9 : vector<8x128xf32> to vector<1x8x128xf32>
    %11 = arith.addf %7, %10 : vector<1x8x128xf32>
    %c0_7 = arith.constant 0 : index
    %c0_8 = arith.constant 0 : index
    %c0_9 = arith.constant 0 : index
    %12 = vector.load %arg4[%c0_7, %c0_8, %c0_9] : memref<1x8x128xf32, #tpu.memory_space<vmem>>, vector<1x8x128xf32>
    tpu.vector_store %arg4[%c0_7, %c0_8, %c0_9], %11 {strides = array<i32>} : memref<1x8x128xf32, #tpu.memory_space<vmem>>, vector<1x8x128xf32>,
    return
  }
  func.func @transform_0(%arg0: i32, %arg1: i32) -> (i32, i32) {
    %c1_i32 = arith.constant 1 : i32
    %0 = arith.muli %arg0, %c1_i32 : i32
    %1 = arith.addi %0, %arg1 : i32
    %c0_i32 = arith.constant 0 : i32
    %c0_i32_0 = arith.constant 0 : i32
    return %1, %c0_i32 : i32, i32
  }
  func.func @transform_1(%arg0: i32, %arg1: i32) -> (i32, i32) {
    %c1_i32 = arith.constant 1 : i32
    %0 = arith.muli %arg0, %c1_i32 : i32
    %1 = arith.addi %0, %arg1 : i32
    %c0_i32 = arith.constant 0 : i32
    %c0_i32_0 = arith.constant 0 : i32
    return %1, %c0_i32 : i32, i32
  }
  func.func @transform_2(%arg0: i32, %arg1: i32) -> (i32, i32, i32) {
    %c0_i32 = arith.constant 0 : i32
    %c0_i32_0 = arith.constant 0 : i32
    %c0_i32_1 = arith.constant 0 : i32
    return %arg0, %c0_i32, %c0_i32_0 : i32, i32, i32
  }
}

</mosaic_0001>

<bundles_post_ra>
// kernel: tpu_custom_call.1
= control target key start
LH: loop header
LB: loop body
LE: loop exit
PB: predicated region body
PF: predicated region fallthrough
CT: control target
= control target key end

     0   :  { %7 = vsyncpa [#allocation3], 0  ;;  %s219_s0 = inlined_call_operand.hbm [shape: f32[16,128], index: 0, kind: input, shape index: {}]   ;;  %s220_s1 = inlined_call_operand.hbm [shape: f32[16,128], index: 1, kind: input, shape index: {}]   ;;  %s221_s2 = inlined_call_operand.hbm [shape: f32[1,8,128], index: 2, kind: output, shape index: {}]  }
   0x1   :  { %8 = vsyncpa [#allocation6], 0 }
   0x2   :  { %9 = vsyncpa [#allocation4], 0  ;;  %s163_s9 = smov [#allocation2]   ;;  %s91_s13 = scalar_lea.hbm %s219_s0, 256 }
   0x3   :  { %s19_s10 = sshll.u32 %s163_s9, 4  ;;  %p92_p0 = scmp.ne.s32.totalorder %s219_s0, %s91_s13  ;;  %s20_s10 = int_to_ptr.vmem [resolvable:$true] %s19_s10 }
   0x4   :  { %p95_p1 = scmp.lt.u32.totalorder %s91_s13, %s219_s0 }
   0x6   :  { %p97_p2 = pnand %p95_p1, %p92_p0 }
   0x8   :  { %100 = shalt.err (!%p97_p2)
}
   0x9   :  { %s101_s18 = scalar_lea.vmem %s20_s10, 256  ;;  %p106_p4 = scmp.lt.s32.totalorder %s20_s10, %s20_s10 }
   0xa   :  { %p102_p3 = scmp.ne.s32.totalorder %s20_s10, %s101_s18  ;;  %p107_p5 = scmp.lt.s32.totalorder %s101_s18, %s101_s18 }
   0xc   :  { %p108_p6 = por %p107_p5, %p106_p4 }
   0xe   :  { %p109_p7 = pnand %p108_p6, %p102_p3 }
  0x10   :  { %112 = shalt.err (!%p109_p7)
}
  0x11   :  { %s164_s19 = smov 128   ;;  %s165_s20 = smov 8  }
  0x12   :  { %25 = dma.hbm_to_vmem [thread:$0]  %s219_s0, 256, %s20_s10, [#allocation3], %s164_s19, %s164_s19, %s165_s20  }
  0x13   :  { %s166_s23 = smov [#allocation5]   ;;  %s113_s27 = scalar_lea.hbm %s220_s1, 256 }
  0x14   :  { %s35_s24 = sshll.u32 %s166_s23, 4  ;;  %p114_p8 = scmp.ne.s32.totalorder %s220_s1, %s113_s27  ;;  %s36_s24 = int_to_ptr.vmem [resolvable:$true] %s35_s24 }
  0x15   :  { %p117_p9 = scmp.lt.u32.totalorder %s113_s27, %s220_s1 }
  0x17   :  { %p119_p10 = pnand %p117_p9, %p114_p8 }
  0x19   :  { %122 = shalt.err (!%p119_p10)
}
  0x1a   :  { %s123_s4 = scalar_lea.vmem %s36_s24, 256  ;;  %p128_p12 = scmp.lt.s32.totalorder %s36_s24, %s36_s24 }
  0x1b   :  { %p124_p11 = scmp.ne.s32.totalorder %s36_s24, %s123_s4  ;;  %p129_p13 = scmp.lt.s32.totalorder %s123_s4, %s123_s4 }
  0x1d   :  { %p130_p0 = por %p129_p13, %p128_p12 }
  0x1f   :  { %p131_p1 = pnand %p130_p0, %p124_p11 }
  0x21   :  { %134 = shalt.err (!%p131_p1)
}
  0x22   :  { %41 = dma.hbm_to_vmem [thread:$0]  %s220_s1, 256, %s36_s24, [#allocation6], %s164_s19, %s164_s19, %s165_s20  }
  0x23   :  { %157 = dma.done.wait [#allocation3], 256  }
  0x24   :  { %158 = vsyncadd [#allocation3], 4294967040 }
  0x25   :  { %159 = dma.done.wait [#allocation6], 256  }
  0x26   :  { %160 = vsyncadd [#allocation6], 4294967040  ;;  %v57_v0 = vld [vmem:[#allocation2] sm:$0xff]  ;;  %v58_v1 = vld [vmem:[#allocation2 + $0x8] sm:$0xff]  ;;  %s167_s6 = smov [#allocation7]  }
  0x27   :  { %v59_v2 = vld [vmem:[#allocation5] sm:$0xff]  ;;  %v60_v3 = vld [vmem:[#allocation5 + $0x8] sm:$0xff]  ;;  %s75_s7 = sshll.u32 %s167_s6, 4  ;;  %s76_s7 = int_to_ptr.vmem [resolvable:$true] %s75_s7 }
  0x28   :  { %v61_v4 = vsub.f32 %v57_v0, %v59_v2  ;;  %v62_v5 = vsub.f32 %v58_v1, %v60_v3  ;;  %s135_s8 = scalar_lea.vmem %s76_s7, 128  ;;  %p140_p3 = scmp.lt.s32.totalorder %s76_s7, %s76_s7 }
  0x29   :  { %p136_p2 = scmp.ne.s32.totalorder %s76_s7, %s135_s8  ;;  %p141_p4 = scmp.lt.s32.totalorder %s135_s8, %s135_s8 }
  0x2a   :  { %v63_v6 = vmul.f32 %v61_v4, %v61_v4  ;;  %v64_v7 = vmul.f32 %v62_v5, %v62_v5 }
  0x2b   :  { %p142_p5 = por %p141_p4, %p140_p3 }
  0x2c   :  { %v66_v8 = vadd.f32 %v64_v7, %v63_v6 }
  0x2d   :  { %p143_p6 = pnand %p142_p5, %p136_p2 }
  0x2e   :  { %68 = vst [vmem:[#allocation7] sm:$0xff] %v66_v8 }
  0x2f   :  { %146 = shalt.err (!%p143_p6)
}
  0x30   :  { %s147_s10 = scalar_lea.hbm %s221_s2, 128 }
  0x31   :  { %p148_p7 = scmp.ne.s32.totalorder %s221_s2, %s147_s10  ;;  %p151_p8 = scmp.lt.u32.totalorder %s147_s10, %s221_s2 }
  0x33   :  { %p153_p9 = pnand %p151_p8, %p148_p7 }
  0x35   :  { %156 = shalt.err (!%p153_p9)
}
  0x36   :  { %78 = dma.vmem_to_hbm [thread:$0]  %s76_s7, 128, %s221_s2, [#allocation4]  }
  0x37   :  { %161 = dma.done.wait [#allocation4], 128  }
  0x38   :  { %162 = vsyncadd [#allocation4], 4294967168 }
  0x39   :  { %82 = vsyncpa [#allocation3], 1 }
  0x3a   :  { %83 = vsyncpa [#allocation6], 1 }
  0x3b   :  { %84 = vsyncpa [#allocation4], 1 }

</bundles_post_ra>
